<compile_context>
chip_gen: v6e
topology: v6e:2x2x1
jax: 0.10.0
libtpu: 0.0.40
codegen_flags: <defaults>
</compile_context>

<pallas_src>
import functools

import jax
import jax.numpy as jnp
from jax.experimental import pallas as pl
from jax.experimental.pallas import tpu as pltpu


# ----------------------------- kernel --------------------------------------


def _neg_scale_kernel(g_ref, o_ref, *, neg_lam):
    # Backward hot path: dx = -lambda * g (one VPU multiply per vreg; the
    # kernel is HBM-bandwidth bound, nothing else to tune).
    o_ref[...] = g_ref[...] * neg_lam


# ----------------------------- layout helpers --------------------------------

# Below this element count a standalone kernel cannot beat an XLA-fused
# elementwise negate (launch overhead dominates, and fusion can make it free).
_MIN_PALLAS_ELEMS = 64 * 1024


@functools.lru_cache(maxsize=1)
def _tile_budget():
    """Per-generation block byte budget and minimum number of grid steps."""
    try:
        kind = jax.devices()[0].device_kind.lower()
    except Exception:  # no device info available -> conservative defaults
        kind = ""
    if "v7" in kind or "7x" in kind:
        # v7x: ~3.2 TB/s HBM and 2 TensorCores -> bigger blocks, >=2 grid
        # steps so the "parallel" axis is actually split across both TCs.
        # 4 double-buffered 6 MiB blocks = 24 MiB < 32 MiB default scoped VMEM.
        return 6 * 1024 * 1024, 2
    if "v6" in kind:
        # 4 x 4 MiB = 16 MiB, well under v6e's 32 MiB default scoped VMEM.
        return 4 * 1024 * 1024, 1
    # v5e / unknown: 4 x 2 MiB = 8 MiB fits the 16 MiB default scoped VMEM.
    return 2 * 1024 * 1024, 1


def _sublane_pack(itemsize):
    # Rows per packed sublane group: 8 for 32-bit, 16 for bf16, 32 for int8/fp8.
    return 8 * max(1, 4 // itemsize)


def _choose_layout(n, itemsize):
    """Pick (lanes, rows, tile_rows) for n flat elements (n % 128 == 0)."""
    pack = _sublane_pack(itemsize)

    # Prefer wide, lane-dense rows (unmasked vst) but never shrink the sublane
    # dimension below one fully packed vreg.
    lanes = 128
    for c in (8192, 4096, 2048, 1024, 512, 256):
        if n % c == 0 and n // c >= pack:
            lanes = c
            break
    rows = n // lanes

    budget, min_steps = _tile_budget()
    max_rows = max(pack, (budget // (lanes * itemsize)) // pack * pack)

    if rows <= max_rows and min_steps <= 1:
        tile_rows = rows                       # single full-dim block (legal)
    else:
        tile_rows = min(rows, max_rows)
        if min_steps > 1:
            # Cap the tile so cdiv(rows, tile_rows) >= min_steps (v7x: 2 TCs).
            tile_rows = min(tile_rows, -(-rows // min_steps))
        tile_rows = max(pack, tile_rows // pack * pack)
    return lanes, rows, tile_rows


# ----------------------------- backward wrappers -----------------------------


def _neg_scale_pallas(g, lambda_):
    """dx = -lambda * g via a lane-dense, row-tiled Pallas kernel.

    Requires g.size % 128 == 0 (no padding path -- the reshape below is an
    XLA bitcast, so the kernel's HBM traffic is exactly one read + one write).
    """
    orig_shape = g.shape
    dtype = g.dtype
    n = int(g.size)
    itemsize = jnp.dtype(dtype).itemsize

    lanes, rows, tile_rows = _choose_layout(n, itemsize)

    # Linear-order-preserving reshape under default layouts -> free bitcast.
    g2 = g.reshape(rows, lanes)

    kernel = functools.partial(_neg_scale_kernel, neg_lam=-float(lambda_))

    out2 = pl.pallas_call(
        kernel,
        out_shape=jax.ShapeDtypeStruct((rows, lanes), dtype),
        grid=(pl.cdiv(rows, tile_rows),),
        in_specs=[pl.BlockSpec((tile_rows, lanes), lambda i: (i, 0))],
        out_specs=pl.BlockSpec((tile_rows, lanes), lambda i: (i, 0)),
        # Reuse g's HBM buffer for dx when the cotangent is donatable
        # (best-effort: XLA inserts a defensive copy if g is still live).
        input_output_aliases={0: 0},
        compiler_params=pltpu.CompilerParams(
            dimension_semantics=("parallel",)),
    )(g2)

    return out2.reshape(orig_shape)


def _neg_scale(g, lambda_):
    if g.size == 0:
        return g
    n = int(g.size)
    if n < _MIN_PALLAS_ELEMS or n % 128 != 0:
        # Small or oddly-sized gradient: let XLA fuse -lambda*g into the
        # surrounding backward graph (2-HBM-pass optimum, no pad/slice passes,
        # no standalone-kernel launch overhead).
        return (-lambda_) * g
    return _neg_scale_pallas(g, lambda_)


# --------------------- GradientReversal module ------------------------------


@functools.partial(jax.custom_vjp, nondiff_argnums=(1,))
def gradient_reversal(x, lambda_=1.0):
    # Forward is the identity; no copy needed in JAX (arrays are immutable).
    return x


def _grl_fwd(x, lambda_):
    return x, None


def _grl_bwd(lambda_, _res, g):
    return (_neg_scale(g, lambda_),)


gradient_reversal.defvjp(_grl_fwd, _grl_bwd)


class GradientReversal:
    """JAX/Pallas equivalent of the PyTorch GradientReversal module."""

    def __init__(self, lambda_=1.0):
        self.lambda_ = float(lambda_)

    def __call__(self, x):
        return gradient_reversal(x, self.lambda_)


# ------------------------------ main ----------------------------------------


if __name__ == "__main__":
    key = jax.random.PRNGKey(0)

    grl = GradientReversal(lambda_=1.0)

    # --- small NCHW input (module-typical shape): forward identity + grad ---
    x = jax.random.normal(key, (2, 4, 16, 16), dtype=jnp.float32)
    y = jax.block_until_ready(grl(x))
    assert y.shape == x.shape and y.dtype == x.dtype
    assert bool(jnp.allclose(y, x)), "forward must be identity"

    w = jnp.arange(x.size, dtype=x.dtype).reshape(x.shape) / x.size
    gx = jax.block_until_ready(jax.grad(lambda a: jnp.sum(grl(a) * w))(x))
    assert bool(jnp.allclose(gx, -1.0 * w)), "backward must be -lambda * g"

    # --- gradient large enough (and 128-divisible) to take the Pallas path ---
    grl_half = GradientReversal(lambda_=0.5)
    xb = jax.random.normal(jax.random.PRNGKey(1), (2, 8, 128, 128),
                           dtype=jnp.float32)
    wb = jax.random.normal(jax.random.PRNGKey(2), xb.shape, dtype=jnp.float32)
    gxb = jax.block_until_ready(
        jax.grad(lambda a: jnp.sum(grl_half(a) * wb))(xb))
    assert bool(jnp.allclose(gxb, -0.5 * wb, atol=1e-6)), \
        "Pallas backward must be -lambda * g"

    # --- direct kernel check in bf16 (exercises packed-sublane tiling) ---
    gb = jax.random.normal(jax.random.PRNGKey(3), (4, 256, 128),
                           dtype=jnp.bfloat16)
    ob = jax.block_until_ready(_neg_scale_pallas(gb, 2.0))
    assert ob.shape == gb.shape and ob.dtype == jnp.bfloat16
    assert bool(jnp.allclose(ob.astype(jnp.float32),
                             -2.0 * gb.astype(jnp.float32))), \
        "bf16 Pallas backward mismatch"

    # --- odd-sized gradient: fused fallback (no pad/slice round-trip) ---
    x3 = jax.random.normal(jax.random.PRNGKey(4), (3, 5, 7), dtype=jnp.float32)
    gx3 = jax.block_until_ready(jax.grad(lambda a: jnp.sum(grl_half(a)))(x3))
    assert bool(jnp.allclose(gx3, -0.5 * jnp.ones_like(x3))), \
        "fallback backward must be -lambda * g"

    print("KERNEL_OK")
</pallas_src>

<mosaic_0001>
module attributes {stable_mosaic.version = 11 : i64} {
  func.func @_neg_scale_kernel(%arg0: i32, %arg1: memref<32x8192xf32, #tpu.memory_space<vmem>>, %arg2: memref<32x8192xf32, #tpu.memory_space<vmem>>) attributes {dimension_semantics = [#tpu.dimension_semantics<parallel>], iteration_bounds = array<i64: 1>, scalar_prefetch = 0 : i64, scratch_operands = 0 : i64, tpu.core_type = #tpu.core_type<tc>, window_params = [{transform_indices = @transform_0, window_bounds = array<i64: 32, 8192>}, {transform_indices = @transform_1, window_bounds = array<i64: 32, 8192>}]} {
    %c0 = arith.constant 0 : index
    %c0_0 = arith.constant 0 : index
    %0 = vector.load %arg1[%c0, %c0_0] : memref<32x8192xf32, #tpu.memory_space<vmem>>, vector<32x8192xf32>
    %cst = arith.constant -5.000000e-01 : f32
    %1 = vector.broadcast %cst : f32 to vector<32x8192xf32>
    %2 = arith.mulf %0, %1 : vector<32x8192xf32>
    %c0_1 = arith.constant 0 : index
    %c0_2 = arith.constant 0 : index
    %3 = vector.load %arg2[%c0_1, %c0_2] : memref<32x8192xf32, #tpu.memory_space<vmem>>, vector<32x8192xf32>
    tpu.vector_store %arg2[%c0_1, %c0_2], %2 {strides = array<i32>} : memref<32x8192xf32, #tpu.memory_space<vmem>>, vector<32x8192xf32>,
    return
  }
  func.func @transform_0(%arg0: i32) -> (i32, i32) {
    %c0_i32 = arith.constant 0 : i32
    %c0_i32_0 = arith.constant 0 : i32
    return %arg0, %c0_i32 : i32, i32
  }
  func.func @transform_1(%arg0: i32) -> (i32, i32) {
    %c0_i32 = arith.constant 0 : i32
    %c0_i32_0 = arith.constant 0 : i32
    return %arg0, %c0_i32 : i32, i32
  }
}

</mosaic_0001>

<bundles_post_ra>
// kernel: tpu_custom_call.1
= control target key start
LH: loop header
LB: loop body
LE: loop exit
PB: predicated region body
PF: predicated region fallthrough
CT: control target
= control target key end

     0   :  { %6 = vsyncpa [#allocation3], 0  ;;  %s885_s0 = inlined_call_operand.hbm [shape: f32[32,8192], index: 0, kind: input, shape index: {}, may-alias: {0,1}]   ;;  %s886_s1 = inlined_call_operand.hbm [shape: f32[32,8192], index: 1, kind: output, shape index: {}, may-alias: {0,1}]  }
   0x1   :  { %7 = vsyncpa [#allocation4], 0  ;;  %s856_s6 = smov [#allocation2]  }
   0x2   :  { %s13_s7 = sshll.u32 %s856_s6, 4  ;;  %s14_s7 = int_to_ptr.vmem [resolvable:$true] %s13_s7 }
   0x3   :  { %s820_s8 = scalar_lea.vmem %s14_s7, 32768  ;;  %p825_p1 = scmp.lt.s32.totalorder %s14_s7, %s14_s7 }
   0x4   :  { %p821_p0 = scmp.ne.s32.totalorder %s14_s7, %s820_s8  ;;  %p826_p2 = scmp.lt.s32.totalorder %s820_s8, %s820_s8 }
   0x6   :  { %p827_p3 = por %p826_p2, %p825_p1 }
   0x8   :  { %p828_p4 = pnand %p827_p3, %p821_p0 }
   0xa   :  { %831 = shalt.err (!%p828_p4)
}
   0xb   :  { %s857_s9 = smov 8192   ;;  %s858_s10 = smov 512  }
   0xc   :  { %19 = dma.hbm_to_vmem [thread:$0]  %s885_s0, 32768, %s14_s7, [#allocation3], %s857_s9, %s857_s9, %s858_s10  }
   0xd   :  { %852 = dma.done.wait [#allocation3], 32768  }
   0xe   :  { %853 = vsyncadd [#allocation3], 4294934528  ;;  %v23_v0 = vld [vmem:[#allocation2] sm:$0xff]  ;;  %v24_v1 = vld [vmem:[#allocation2 + $0x8] sm:$0xff]  ;;  %s859_s13 = smov [#allocation5]  }
   0xf   :  { %v25_v2 = vld [vmem:[#allocation2 + $0x10] sm:$0xff]  ;;  %s876_s14 = sshll.u32 %s859_s13, 4  ;;  %v279_v3 = vmul.f32 -0.5, %v23_v0  ;;  %v280_v4 = vmul.f32 -0.5, %v24_v1  ;;  %v26_v6 = vld [vmem:[#allocation2 + $0x18] sm:$0xff]  ;;  %v27_v7 = vld [vmem:[#allocation2 + $0x20] sm:$0xff]  ;;  %s797_s14 = int_to_ptr.vmem [resolvable:$true] %s876_s14 }
  0x10   :  { %v281_v5 = vmul.f32 -0.5, %v25_v2  ;;  %v28_v8 = vld [vmem:[#allocation2 + $0x28] sm:$0xff]  ;;  %v282_v9 = vmul.f32 -0.5, %v26_v6  ;;  %v283_v10 = vmul.f32 -0.5, %v27_v7  ;;  %v29_v12 = vld [vmem:[#allocation2 + $0x30] sm:$0xff]  ;;  %v30_v13 = vld [vmem:[#allocation2 + $0x38] sm:$0xff]  ;;  %p837_p6 = scmp.lt.s32.totalorder %s797_s14, %s797_s14 }
  0x11   :  { %v284_v11 = vmul.f32 -0.5, %v28_v8  ;;  %v31_v14 = vld [vmem:[#allocation2 + $0x40] sm:$0xff]  ;;  %535 = vst [vmem:[#allocation5] sm:$0xff] %v279_v3  ;;  %536 = vst [vmem:[#allocation5 + $0x8] sm:$0xff] %v280_v4  ;;  %v285_v15 = vmul.f32 -0.5, %v29_v12  ;;  %v286_v16 = vmul.f32 -0.5, %v30_v13 }
  0x12   :  { %537 = vst [vmem:[#allocation5 + $0x10] sm:$0xff] %v281_v5  ;;  %v287_v17 = vmul.f32 -0.5, %v31_v14  ;;  %v32_v18 = vld [vmem:[#allocation2 + $0x48] sm:$0xff]  ;;  %v33_v19 = vld [vmem:[#allocation2 + $0x50] sm:$0xff]  ;;  %v34_v20 = vld [vmem:[#allocation2 + $0x58] sm:$0xff]  ;;  %s832_s0 = scalar_lea.vmem %s797_s14, 32768 }
  0x13   :  { %538 = vst [vmem:[#allocation5 + $0x18] sm:$0xff] %v282_v9  ;;  %539 = vst [vmem:[#allocation5 + $0x20] sm:$0xff] %v283_v10  ;;  %v288_v21 = vmul.f32 -0.5, %v32_v18  ;;  %v289_v22 = vmul.f32 -0.5, %v33_v19  ;;  %v290_v23 = vmul.f32 -0.5, %v34_v20  ;;  %v35_v24 = vld [vmem:[#allocation2 + $0x60] sm:$0xff]  ;;  %p833_p5 = scmp.ne.s32.totalorder %s797_s14, %s832_s0  ;;  %p838_p7 = scmp.lt.s32.totalorder %s832_s0, %s832_s0 }
  0x14   :  { %540 = vst [vmem:[#allocation5 + $0x28] sm:$0xff] %v284_v11  ;;  %v36_v25 = vld [vmem:[#allocation2 + $0x68] sm:$0xff]  ;;  %v37_v26 = vld [vmem:[#allocation2 + $0x70] sm:$0xff]  ;;  %541 = vst [vmem:[#allocation5 + $0x30] sm:$0xff] %v285_v15  ;;  %v291_v27 = vmul.f32 -0.5, %v35_v24 }
  0x15   :  { %542 = vst [vmem:[#allocation5 + $0x38] sm:$0xff] %v286_v16  ;;  %543 = vst [vmem:[#allocation5 + $0x40] sm:$0xff] %v287_v17  ;;  %v292_v28 = vmul.f32 -0.5, %v36_v25  ;;  %v293_v29 = vmul.f32 -0.5, %v37_v26  ;;  %v38_v30 = vld [vmem:[#allocation2 + $0x78] sm:$0xff]  ;;  %v39_v31 = vld [vmem:[#allocation2 + $0x80] sm:$0xff]  ;;  %p839_p8 = por %p838_p7, %p837_p6 }
  0x16   :  { %v40_v32 = vld [vmem:[#allocation2 + $0x88] sm:$0xff]  ;;  %544 = vst [vmem:[#allocation5 + $0x48] sm:$0xff] %v288_v21  ;;  %545 = vst [vmem:[#allocation5 + $0x50] sm:$0xff] %v289_v22  ;;  %v294_v33 = vmul.f32 -0.5, %v38_v30  ;;  %v295_v34 = vmul.f32 -0.5, %v39_v31  ;;  %v41_v36 = vld [vmem:[#allocation2 + $0x90] sm:$0xff] }
  0x17   :  { %546 = vst [vmem:[#allocation5 + $0x58] sm:$0xff] %v290_v23  ;;  %v296_v35 = vmul.f32 -0.5, %v40_v32  ;;  %v42_v37 = vld [vmem:[#allocation2 + $0x98] sm:$0xff]  ;;  %v43_v38 = vld [vmem:[#allocation2 + $0xa0] sm:$0xff]  ;;  %547 = vst [vmem:[#allocation5 + $0x60] sm:$0xff] %v291_v27  ;;  %v297_v39 = vmul.f32 -0.5, %v41_v36  ;;  %p840_p9 = pnand %p839_p8, %p833_p5 }
  0x18   :  { %548 = vst [vmem:[#allocation5 + $0x68] sm:$0xff] %v292_v28  ;;  %549 = vst [vmem:[#allocation5 + $0x70] sm:$0xff] %v293_v29  ;;  %v298_v40 = vmul.f32 -0.5, %v42_v37  ;;  %v299_v41 = vmul.f32 -0.5, %v43_v38  ;;  %v44_v42 = vld [vmem:[#allocation2 + $0xa8] sm:$0xff]  ;;  %v45_v43 = vld [vmem:[#allocation2 + $0xb0] sm:$0xff] }
  0x19   :  { %v46_v44 = vld [vmem:[#allocation2 + $0xb8] sm:$0xff]  ;;  %550 = vst [vmem:[#allocation5 + $0x78] sm:$0xff] %v294_v33  ;;  %551 = vst [vmem:[#allocation5 + $0x80] sm:$0xff] %v295_v34  ;;  %v300_v45 = vmul.f32 -0.5, %v44_v42  ;;  %v301_v46 = vmul.f32 -0.5, %v45_v43  ;;  %v47_v48 = vld [vmem:[#allocation2 + $0xc0] sm:$0xff] }
  0x1a   :  { %552 = vst [vmem:[#allocation5 + $0x88] sm:$0xff] %v296_v35  ;;  %v302_v47 = vmul.f32 -0.5, %v46_v44  ;;  %v48_v49 = vld [vmem:[#allocation2 + $0xc8] sm:$0xff]  ;;  %v49_v50 = vld [vmem:[#allocation2 + $0xd0] sm:$0xff]  ;;  %553 = vst [vmem:[#allocation5 + $0x90] sm:$0xff] %v297_v39  ;;  %v303_v51 = vmul.f32 -0.5, %v47_v48 }
  0x1b   :  { %554 = vst [vmem:[#allocation5 + $0x98] sm:$0xff] %v298_v40  ;;  %555 = vst [vmem:[#allocation5 + $0xa0] sm:$0xff] %v299_v41  ;;  %v304_v52 = vmul.f32 -0.5, %v48_v49  ;;  %v305_v53 = vmul.f32 -0.5, %v49_v50  ;;  %v50_v54 = vld [vmem:[#allocation2 + $0xd8] sm:$0xff]  ;;  %v51_v55 = vld [vmem:[#allocation2 + $0xe0] sm:$0xff] }
  0x1c   :  { %v52_v56 = vld [vmem:[#allocation2 + $0xe8] sm:$0xff]  ;;  %556 = vst [vmem:[#allocation5 + $0xa8] sm:$0xff] %v300_v45  ;;  %557 = vst [vmem:[#allocation5 + $0xb0] sm:$0xff] %v301_v46  ;;  %v306_v57 = vmul.f32 -0.5, %v50_v54  ;;  %v307_v58 = vmul.f32 -0.5, %v51_v55  ;;  %v53_v60 = vld [vmem:[#allocation2 + $0xf0] sm:$0xff] }
  0x1d   :  { %558 = vst [vmem:[#allocation5 + $0xb8] sm:$0xff] %v302_v47  ;;  %v308_v59 = vmul.f32 -0.5, %v52_v56  ;;  %v54_v61 = vld [vmem:[#allocation2 + $0xf8] sm:$0xff]  ;;  %v55_v62 = vld [vmem:[#allocation2 + $0x100] sm:$0xff]  ;;  %559 = vst [vmem:[#allocation5 + $0xc0] sm:$0xff] %v303_v51  ;;  %v309_v63 = vmul.f32 -0.5, %v53_v60 }
  0x1e   :  { %560 = vst [vmem:[#allocation5 + $0xc8] sm:$0xff] %v304_v52  ;;  %561 = vst [vmem:[#allocation5 + $0xd0] sm:$0xff] %v305_v53  ;;  %v310_v0 = vmul.f32 -0.5, %v54_v61  ;;  %v311_v1 = vmul.f32 -0.5, %v55_v62  ;;  %v56_v2 = vld [vmem:[#allocation2 + $0x108] sm:$0xff]  ;;  %v57_v3 = vld [vmem:[#allocation2 + $0x110] sm:$0xff] }
  0x1f   :  { %v58_v4 = vld [vmem:[#allocation2 + $0x118] sm:$0xff]  ;;  %562 = vst [vmem:[#allocation5 + $0xd8] sm:$0xff] %v306_v57  ;;  %563 = vst [vmem:[#allocation5 + $0xe0] sm:$0xff] %v307_v58  ;;  %v312_v5 = vmul.f32 -0.5, %v56_v2  ;;  %v313_v6 = vmul.f32 -0.5, %v57_v3  ;;  %v59_v8 = vld [vmem:[#allocation2 + $0x120] sm:$0xff] }
  0x20   :  { %564 = vst [vmem:[#allocation5 + $0xe8] sm:$0xff] %v308_v59  ;;  %v314_v7 = vmul.f32 -0.5, %v58_v4  ;;  %v60_v9 = vld [vmem:[#allocation2 + $0x128] sm:$0xff]  ;;  %v61_v10 = vld [vmem:[#allocation2 + $0x130] sm:$0xff]  ;;  %565 = vst [vmem:[#allocation5 + $0xf0] sm:$0xff] %v309_v63  ;;  %v315_v11 = vmul.f32 -0.5, %v59_v8 }
  0x21   :  { %566 = vst [vmem:[#allocation5 + $0xf8] sm:$0xff] %v310_v0  ;;  %567 = vst [vmem:[#allocation5 + $0x100] sm:$0xff] %v311_v1  ;;  %v316_v12 = vmul.f32 -0.5, %v60_v9  ;;  %v317_v13 = vmul.f32 -0.5, %v61_v10  ;;  %v62_v14 = vld [vmem:[#allocation2 + $0x138] sm:$0xff]  ;;  %v63_v15 = vld [vmem:[#allocation2 + $0x140] sm:$0xff] }
  0x22   :  { %v64_v16 = vld [vmem:[#allocation2 + $0x148] sm:$0xff]  ;;  %568 = vst [vmem:[#allocation5 + $0x108] sm:$0xff] %v312_v5  ;;  %569 = vst [vmem:[#allocation5 + $0x110] sm:$0xff] %v313_v6  ;;  %v318_v17 = vmul.f32 -0.5, %v62_v14  ;;  %v319_v18 = vmul.f32 -0.5, %v63_v15  ;;  %v65_v20 = vld [vmem:[#allocation2 + $0x150] sm:$0xff] }
  0x23   :  { %570 = vst [vmem:[#allocation5 + $0x118] sm:$0xff] %v314_v7  ;;  %v320_v19 = vmul.f32 -0.5, %v64_v16  ;;  %v66_v21 = vld [vmem:[#allocation2 + $0x158] sm:$0xff]  ;;  %v67_v22 = vld [vmem:[#allocation2 + $0x160] sm:$0xff]  ;;  %571 = vst [vmem:[#allocation5 + $0x120] sm:$0xff] %v315_v11  ;;  %v321_v23 = vmul.f32 -0.5, %v65_v20 }
  0x24   :  { %572 = vst [vmem:[#allocation5 + $0x128] sm:$0xff] %v316_v12  ;;  %573 = vst [vmem:[#allocation5 + $0x130] sm:$0xff] %v317_v13  ;;  %v322_v24 = vmul.f32 -0.5, %v66_v21  ;;  %v323_v25 = vmul.f32 -0.5, %v67_v22  ;;  %v68_v26 = vld [vmem:[#allocation2 + $0x168] sm:$0xff]  ;;  %v69_v27 = vld [vmem:[#allocation2 + $0x170] sm:$0xff] }
  0x25   :  { %v70_v28 = vld [vmem:[#allocation2 + $0x178] sm:$0xff]  ;;  %574 = vst [vmem:[#allocation5 + $0x138] sm:$0xff] %v318_v17  ;;  %575 = vst [vmem:[#allocation5 + $0x140] sm:$0xff] %v319_v18  ;;  %v324_v29 = vmul.f32 -0.5, %v68_v26  ;;  %v325_v30 = vmul.f32 -0.5, %v69_v27  ;;  %v71_v32 = vld [vmem:[#allocation2 + $0x180] sm:$0xff] }
  0x26   :  { %576 = vst [vmem:[#allocation5 + $0x148] sm:$0xff] %v320_v19  ;;  %v326_v31 = vmul.f32 -0.5, %v70_v28  ;;  %v72_v33 = vld [vmem:[#allocation2 + $0x188] sm:$0xff]  ;;  %v73_v34 = vld [vmem:[#allocation2 + $0x190] sm:$0xff]  ;;  %577 = vst [vmem:[#allocation5 + $0x150] sm:$0xff] %v321_v23  ;;  %v327_v35 = vmul.f32 -0.5, %v71_v32 }
  0x27   :  { %578 = vst [vmem:[#allocation5 + $0x158] sm:$0xff] %v322_v24  ;;  %579 = vst [vmem:[#allocation5 + $0x160] sm:$0xff] %v323_v25  ;;  %v328_v36 = vmul.f32 -0.5, %v72_v33  ;;  %v329_v37 = vmul.f32 -0.5, %v73_v34  ;;  %v74_v38 = vld [vmem:[#allocation2 + $0x198] sm:$0xff]  ;;  %v75_v39 = vld [vmem:[#allocation2 + $0x1a0] sm:$0xff] }
  0x28   :  { %v76_v40 = vld [vmem:[#allocation2 + $0x1a8] sm:$0xff]  ;;  %580 = vst [vmem:[#allocation5 + $0x168] sm:$0xff] %v324_v29  ;;  %581 = vst [vmem:[#allocation5 + $0x170] sm:$0xff] %v325_v30  ;;  %v330_v41 = vmul.f32 -0.5, %v74_v38  ;;  %v331_v42 = vmul.f32 -0.5, %v75_v39  ;;  %v77_v44 = vld [vmem:[#allocation2 + $0x1b0] sm:$0xff] }
  0x29   :  { %582 = vst [vmem:[#allocation5 + $0x178] sm:$0xff] %v326_v31  ;;  %v332_v43 = vmul.f32 -0.5, %v76_v40  ;;  %v78_v45 = vld [vmem:[#allocation2 + $0x1b8] sm:$0xff]  ;;  %v79_v46 = vld [vmem:[#allocation2 + $0x1c0] sm:$0xff]  ;;  %583 = vst [vmem:[#allocation5 + $0x180] sm:$0xff] %v327_v35  ;;  %v333_v47 = vmul.f32 -0.5, %v77_v44 }
  0x2a   :  { %584 = vst [vmem:[#allocation5 + $0x188] sm:$0xff] %v328_v36  ;;  %585 = vst [vmem:[#allocation5 + $0x190] sm:$0xff] %v329_v37  ;;  %v334_v48 = vmul.f32 -0.5, %v78_v45  ;;  %v335_v49 = vmul.f32 -0.5, %v79_v46  ;;  %v80_v50 = vld [vmem:[#allocation2 + $0x1c8] sm:$0xff]  ;;  %v81_v51 = vld [vmem:[#allocation2 + $0x1d0] sm:$0xff] }
  0x2b   :  { %v82_v52 = vld [vmem:[#allocation2 + $0x1d8] sm:$0xff]  ;;  %586 = vst [vmem:[#allocation5 + $0x198] sm:$0xff] %v330_v41  ;;  %587 = vst [vmem:[#allocation5 + $0x1a0] sm:$0xff] %v331_v42  ;;  %v336_v53 = vmul.f32 -0.5, %v80_v50  ;;  %v337_v54 = vmul.f32 -0.5, %v81_v51  ;;  %v83_v56 = vld [vmem:[#allocation2 + $0x1e0] sm:$0xff] }
  0x2c   :  { %588 = vst [vmem:[#allocation5 + $0x1a8] sm:$0xff] %v332_v43  ;;  %v338_v55 = vmul.f32 -0.5, %v82_v52  ;;  %v84_v57 = vld [vmem:[#allocation2 + $0x1e8] sm:$0xff]  ;;  %v85_v58 = vld [vmem:[#allocation2 + $0x1f0] sm:$0xff]  ;;  %589 = vst [vmem:[#allocation5 + $0x1b0] sm:$0xff] %v333_v47  ;;  %v339_v59 = vmul.f32 -0.5, %v83_v56 }
  0x2d   :  { %590 = vst [vmem:[#allocation5 + $0x1b8] sm:$0xff] %v334_v48  ;;  %591 = vst [vmem:[#allocation5 + $0x1c0] sm:$0xff] %v335_v49  ;;  %v340_v60 = vmul.f32 -0.5, %v84_v57  ;;  %v341_v61 = vmul.f32 -0.5, %v85_v58  ;;  %v86_v62 = vld [vmem:[#allocation2 + $0x1f8] sm:$0xff]  ;;  %v87_v63 = vld [vmem:[#allocation2 + $0x200] sm:$0xff] }
  0x2e   :  { %v88_v0 = vld [vmem:[#allocation2 + $0x208] sm:$0xff]  ;;  %592 = vst [vmem:[#allocation5 + $0x1c8] sm:$0xff] %v336_v53  ;;  %593 = vst [vmem:[#allocation5 + $0x1d0] sm:$0xff] %v337_v54  ;;  %v342_v1 = vmul.f32 -0.5, %v86_v62  ;;  %v343_v2 = vmul.f32 -0.5, %v87_v63  ;;  %v89_v4 = vld [vmem:[#allocation2 + $0x210] sm:$0xff] }
  0x2f   :  { %594 = vst [vmem:[#allocation5 + $0x1d8] sm:$0xff] %v338_v55  ;;  %v344_v3 = vmul.f32 -0.5, %v88_v0  ;;  %v90_v5 = vld [vmem:[#allocation2 + $0x218] sm:$0xff]  ;;  %v91_v6 = vld [vmem:[#allocation2 + $0x220] sm:$0xff]  ;;  %595 = vst [vmem:[#allocation5 + $0x1e0] sm:$0xff] %v339_v59  ;;  %v345_v7 = vmul.f32 -0.5, %v89_v4 }
  0x30   :  { %596 = vst [vmem:[#allocation5 + $0x1e8] sm:$0xff] %v340_v60  ;;  %597 = vst [vmem:[#allocation5 + $0x1f0] sm:$0xff] %v341_v61  ;;  %v346_v8 = vmul.f32 -0.5, %v90_v5  ;;  %v347_v9 = vmul.f32 -0.5, %v91_v6  ;;  %v92_v10 = vld [vmem:[#allocation2 + $0x228] sm:$0xff]  ;;  %v93_v11 = vld [vmem:[#allocation2 + $0x230] sm:$0xff] }
  0x31   :  { %v94_v12 = vld [vmem:[#allocation2 + $0x238] sm:$0xff]  ;;  %598 = vst [vmem:[#allocation5 + $0x1f8] sm:$0xff] %v342_v1  ;;  %599 = vst [vmem:[#allocation5 + $0x200] sm:$0xff] %v343_v2  ;;  %v348_v13 = vmul.f32 -0.5, %v92_v10  ;;  %v349_v14 = vmul.f32 -0.5, %v93_v11  ;;  %v95_v16 = vld [vmem:[#allocation2 + $0x240] sm:$0xff] }
  0x32   :  { %600 = vst [vmem:[#allocation5 + $0x208] sm:$0xff] %v344_v3  ;;  %v350_v15 = vmul.f32 -0.5, %v94_v12  ;;  %v96_v17 = vld [vmem:[#allocation2 + $0x248] sm:$0xff]  ;;  %v97_v18 = vld [vmem:[#allocation2 + $0x250] sm:$0xff]  ;;  %601 = vst [vmem:[#allocation5 + $0x210] sm:$0xff] %v345_v7  ;;  %v351_v19 = vmul.f32 -0.5, %v95_v16 }
  0x33   :  { %602 = vst [vmem:[#allocation5 + $0x218] sm:$0xff] %v346_v8  ;;  %603 = vst [vmem:[#allocation5 + $0x220] sm:$0xff] %v347_v9  ;;  %v352_v20 = vmul.f32 -0.5, %v96_v17  ;;  %v353_v21 = vmul.f32 -0.5, %v97_v18  ;;  %v98_v22 = vld [vmem:[#allocation2 + $0x258] sm:$0xff]  ;;  %v99_v23 = vld [vmem:[#allocation2 + $0x260] sm:$0xff] }
  0x34   :  { %v100_v24 = vld [vmem:[#allocation2 + $0x268] sm:$0xff]  ;;  %604 = vst [vmem:[#allocation5 + $0x228] sm:$0xff] %v348_v13  ;;  %605 = vst [vmem:[#allocation5 + $0x230] sm:$0xff] %v349_v14  ;;  %v354_v25 = vmul.f32 -0.5, %v98_v22  ;;  %v355_v26 = vmul.f32 -0.5, %v99_v23  ;;  %v101_v28 = vld [vmem:[#allocation2 + $0x270] sm:$0xff] }
  0x35   :  { %606 = vst [vmem:[#allocation5 + $0x238] sm:$0xff] %v350_v15  ;;  %v356_v27 = vmul.f32 -0.5, %v100_v24  ;;  %v102_v29 = vld [vmem:[#allocation2 + $0x278] sm:$0xff]  ;;  %v103_v30 = vld [vmem:[#allocation2 + $0x280] sm:$0xff]  ;;  %607 = vst [vmem:[#allocation5 + $0x240] sm:$0xff] %v351_v19  ;;  %v357_v31 = vmul.f32 -0.5, %v101_v28 }
  0x36   :  { %608 = vst [vmem:[#allocation5 + $0x248] sm:$0xff] %v352_v20  ;;  %609 = vst [vmem:[#allocation5 + $0x250] sm:$0xff] %v353_v21  ;;  %v358_v32 = vmul.f32 -0.5, %v102_v29  ;;  %v359_v33 = vmul.f32 -0.5, %v103_v30  ;;  %v104_v34 = vld [vmem:[#allocation2 + $0x288] sm:$0xff]  ;;  %v105_v35 = vld [vmem:[#allocation2 + $0x290] sm:$0xff] }
  0x37   :  { %v106_v36 = vld [vmem:[#allocation2 + $0x298] sm:$0xff]  ;;  %610 = vst [vmem:[#allocation5 + $0x258] sm:$0xff] %v354_v25  ;;  %611 = vst [vmem:[#allocation5 + $0x260] sm:$0xff] %v355_v26  ;;  %v360_v37 = vmul.f32 -0.5, %v104_v34  ;;  %v361_v38 = vmul.f32 -0.5, %v105_v35  ;;  %v107_v40 = vld [vmem:[#allocation2 + $0x2a0] sm:$0xff] }
  0x38   :  { %612 = vst [vmem:[#allocation5 + $0x268] sm:$0xff] %v356_v27  ;;  %v362_v39 = vmul.f32 -0.5, %v106_v36  ;;  %v108_v41 = vld [vmem:[#allocation2 + $0x2a8] sm:$0xff]  ;;  %v109_v42 = vld [vmem:[#allocation2 + $0x2b0] sm:$0xff]  ;;  %613 = vst [vmem:[#allocation5 + $0x270] sm:$0xff] %v357_v31  ;;  %v363_v43 = vmul.f32 -0.5, %v107_v40 }
  0x39   :  { %614 = vst [vmem:[#allocation5 + $0x278] sm:$0xff] %v358_v32  ;;  %615 = vst [vmem:[#allocation5 + $0x280] sm:$0xff] %v359_v33  ;;  %v364_v44 = vmul.f32 -0.5, %v108_v41  ;;  %v365_v45 = vmul.f32 -0.5, %v109_v42  ;;  %v110_v46 = vld [vmem:[#allocation2 + $0x2b8] sm:$0xff]  ;;  %v111_v47 = vld [vmem:[#allocation2 + $0x2c0] sm:$0xff] }
  0x3a   :  { %v112_v48 = vld [vmem:[#allocation2 + $0x2c8] sm:$0xff]  ;;  %616 = vst [vmem:[#allocation5 + $0x288] sm:$0xff] %v360_v37  ;;  %617 = vst [vmem:[#allocation5 + $0x290] sm:$0xff] %v361_v38  ;;  %v366_v49 = vmul.f32 -0.5, %v110_v46  ;;  %v367_v50 = vmul.f32 -0.5, %v111_v47  ;;  %v113_v52 = vld [vmem:[#allocation2 + $0x2d0] sm:$0xff] }
  0x3b   :  { %618 = vst [vmem:[#allocation5 + $0x298] sm:$0xff] %v362_v39  ;;  %v368_v51 = vmul.f32 -0.5, %v112_v48  ;;  %v114_v53 = vld [vmem:[#allocation2 + $0x2d8] sm:$0xff]  ;;  %v115_v54 = vld [vmem:[#allocation2 + $0x2e0] sm:$0xff]  ;;  %619 = vst [vmem:[#allocation5 + $0x2a0] sm:$0xff] %v363_v43  ;;  %v369_v55 = vmul.f32 -0.5, %v113_v52 }
  0x3c   :  { %620 = vst [vmem:[#allocation5 + $0x2a8] sm:$0xff] %v364_v44  ;;  %621 = vst [vmem:[#allocation5 + $0x2b0] sm:$0xff] %v365_v45  ;;  %v370_v56 = vmul.f32 -0.5, %v114_v53  ;;  %v371_v57 = vmul.f32 -0.5, %v115_v54  ;;  %v116_v58 = vld [vmem:[#allocation2 + $0x2e8] sm:$0xff]  ;;  %v117_v59 = vld [vmem:[#allocation2 + $0x2f0] sm:$0xff] }
  0x3d   :  { %v118_v60 = vld [vmem:[#allocation2 + $0x2f8] sm:$0xff]  ;;  %622 = vst [vmem:[#allocation5 + $0x2b8] sm:$0xff] %v366_v49  ;;  %623 = vst [vmem:[#allocation5 + $0x2c0] sm:$0xff] %v367_v50  ;;  %v372_v61 = vmul.f32 -0.5, %v116_v58  ;;  %v373_v62 = vmul.f32 -0.5, %v117_v59  ;;  %v119_v0 = vld [vmem:[#allocation2 + $0x300] sm:$0xff] }
  0x3e   :  { %624 = vst [vmem:[#allocation5 + $0x2c8] sm:$0xff] %v368_v51  ;;  %v374_v63 = vmul.f32 -0.5, %v118_v60  ;;  %v120_v1 = vld [vmem:[#allocation2 + $0x308] sm:$0xff]  ;;  %v121_v2 = vld [vmem:[#allocation2 + $0x310] sm:$0xff]  ;;  %625 = vst [vmem:[#allocation5 + $0x2d0] sm:$0xff] %v369_v55  ;;  %v375_v3 = vmul.f32 -0.5, %v119_v0 }
  0x3f   :  { %626 = vst [vmem:[#allocation5 + $0x2d8] sm:$0xff] %v370_v56  ;;  %627 = vst [vmem:[#allocation5 + $0x2e0] sm:$0xff] %v371_v57  ;;  %v376_v4 = vmul.f32 -0.5, %v120_v1  ;;  %v377_v5 = vmul.f32 -0.5, %v121_v2  ;;  %v122_v6 = vld [vmem:[#allocation2 + $0x318] sm:$0xff]  ;;  %v123_v7 = vld [vmem:[#allocation2 + $0x320] sm:$0xff] }
  0x40   :  { %v124_v8 = vld [vmem:[#allocation2 + $0x328] sm:$0xff]  ;;  %628 = vst [vmem:[#allocation5 + $0x2e8] sm:$0xff] %v372_v61  ;;  %629 = vst [vmem:[#allocation5 + $0x2f0] sm:$0xff] %v373_v62  ;;  %v378_v9 = vmul.f32 -0.5, %v122_v6  ;;  %v379_v10 = vmul.f32 -0.5, %v123_v7  ;;  %v125_v12 = vld [vmem:[#allocation2 + $0x330] sm:$0xff] }
  0x41   :  { %630 = vst [vmem:[#allocation5 + $0x2f8] sm:$0xff] %v374_v63  ;;  %v380_v11 = vmul.f32 -0.5, %v124_v8  ;;  %v126_v13 = vld [vmem:[#allocation2 + $0x338] sm:$0xff]  ;;  %v127_v14 = vld [vmem:[#allocation2 + $0x340] sm:$0xff]  ;;  %631 = vst [vmem:[#allocation5 + $0x300] sm:$0xff] %v375_v3  ;;  %v381_v15 = vmul.f32 -0.5, %v125_v12 }
  0x42   :  { %632 = vst [vmem:[#allocation5 + $0x308] sm:$0xff] %v376_v4  ;;  %633 = vst [vmem:[#allocation5 + $0x310] sm:$0xff] %v377_v5  ;;  %v382_v16 = vmul.f32 -0.5, %v126_v13  ;;  %v383_v17 = vmul.f32 -0.5, %v127_v14  ;;  %v128_v18 = vld [vmem:[#allocation2 + $0x348] sm:$0xff]  ;;  %v129_v19 = vld [vmem:[#allocation2 + $0x350] sm:$0xff] }
  0x43   :  { %v130_v20 = vld [vmem:[#allocation2 + $0x358] sm:$0xff]  ;;  %634 = vst [vmem:[#allocation5 + $0x318] sm:$0xff] %v378_v9  ;;  %635 = vst [vmem:[#allocation5 + $0x320] sm:$0xff] %v379_v10  ;;  %v384_v21 = vmul.f32 -0.5, %v128_v18  ;;  %v385_v22 = vmul.f32 -0.5, %v129_v19  ;;  %v131_v24 = vld [vmem:[#allocation2 + $0x360] sm:$0xff] }
  0x44   :  { %636 = vst [vmem:[#allocation5 + $0x328] sm:$0xff] %v380_v11  ;;  %v386_v23 = vmul.f32 -0.5, %v130_v20  ;;  %v132_v25 = vld [vmem:[#allocation2 + $0x368] sm:$0xff]  ;;  %v133_v26 = vld [vmem:[#allocation2 + $0x370] sm:$0xff]  ;;  %637 = vst [vmem:[#allocation5 + $0x330] sm:$0xff] %v381_v15  ;;  %v387_v27 = vmul.f32 -0.5, %v131_v24 }
  0x45   :  { %638 = vst [vmem:[#allocation5 + $0x338] sm:$0xff] %v382_v16  ;;  %639 = vst [vmem:[#allocation5 + $0x340] sm:$0xff] %v383_v17  ;;  %v388_v28 = vmul.f32 -0.5, %v132_v25  ;;  %v389_v29 = vmul.f32 -0.5, %v133_v26  ;;  %v134_v30 = vld [vmem:[#allocation2 + $0x378] sm:$0xff]  ;;  %v135_v31 = vld [vmem:[#allocation2 + $0x380] sm:$0xff] }
  0x46   :  { %v136_v32 = vld [vmem:[#allocation2 + $0x388] sm:$0xff]  ;;  %640 = vst [vmem:[#allocation5 + $0x348] sm:$0xff] %v384_v21  ;;  %641 = vst [vmem:[#allocation5 + $0x350] sm:$0xff] %v385_v22  ;;  %v390_v33 = vmul.f32 -0.5, %v134_v30  ;;  %v391_v34 = vmul.f32 -0.5, %v135_v31  ;;  %v137_v36 = vld [vmem:[#allocation2 + $0x390] sm:$0xff] }
  0x47   :  { %642 = vst [vmem:[#allocation5 + $0x358] sm:$0xff] %v386_v23  ;;  %v392_v35 = vmul.f32 -0.5, %v136_v32  ;;  %v138_v37 = vld [vmem:[#allocation2 + $0x398] sm:$0xff]  ;;  %v139_v38 = vld [vmem:[#allocation2 + $0x3a0] sm:$0xff]  ;;  %643 = vst [vmem:[#allocation5 + $0x360] sm:$0xff] %v387_v27  ;;  %v393_v39 = vmul.f32 -0.5, %v137_v36 }
  0x48   :  { %644 = vst [vmem:[#allocation5 + $0x368] sm:$0xff] %v388_v28  ;;  %645 = vst [vmem:[#allocation5 + $0x370] sm:$0xff] %v389_v29  ;;  %v394_v40 = vmul.f32 -0.5, %v138_v37  ;;  %v395_v41 = vmul.f32 -0.5, %v139_v38  ;;  %v140_v42 = vld [vmem:[#allocation2 + $0x3a8] sm:$0xff]  ;;  %v141_v43 = vld [vmem:[#allocation2 + $0x3b0] sm:$0xff] }
  0x49   :  { %v142_v44 = vld [vmem:[#allocation2 + $0x3b8] sm:$0xff]  ;;  %646 = vst [vmem:[#allocation5 + $0x378] sm:$0xff] %v390_v33  ;;  %647 = vst [vmem:[#allocation5 + $0x380] sm:$0xff] %v391_v34  ;;  %v396_v45 = vmul.f32 -0.5, %v140_v42  ;;  %v397_v46 = vmul.f32 -0.5, %v141_v43  ;;  %v143_v48 = vld [vmem:[#allocation2 + $0x3c0] sm:$0xff] }
  0x4a   :  { %648 = vst [vmem:[#allocation5 + $0x388] sm:$0xff] %v392_v35  ;;  %v398_v47 = vmul.f32 -0.5, %v142_v44  ;;  %v144_v49 = vld [vmem:[#allocation2 + $0x3c8] sm:$0xff]  ;;  %v145_v50 = vld [vmem:[#allocation2 + $0x3d0] sm:$0xff]  ;;  %649 = vst [vmem:[#allocation5 + $0x390] sm:$0xff] %v393_v39  ;;  %v399_v51 = vmul.f32 -0.5, %v143_v48 }
  0x4b   :  { %650 = vst [vmem:[#allocation5 + $0x398] sm:$0xff] %v394_v40  ;;  %651 = vst [vmem:[#allocation5 + $0x3a0] sm:$0xff] %v395_v41  ;;  %v400_v52 = vmul.f32 -0.5, %v144_v49  ;;  %v401_v53 = vmul.f32 -0.5, %v145_v50  ;;  %v146_v54 = vld [vmem:[#allocation2 + $0x3d8] sm:$0xff]  ;;  %v147_v55 = vld [vmem:[#allocation2 + $0x3e0] sm:$0xff] }
  0x4c   :  { %v148_v56 = vld [vmem:[#allocation2 + $0x3e8] sm:$0xff]  ;;  %652 = vst [vmem:[#allocation5 + $0x3a8] sm:$0xff] %v396_v45  ;;  %653 = vst [vmem:[#allocation5 + $0x3b0] sm:$0xff] %v397_v46  ;;  %v402_v57 = vmul.f32 -0.5, %v146_v54  ;;  %v403_v58 = vmul.f32 -0.5, %v147_v55  ;;  %v149_v60 = vld [vmem:[#allocation2 + $0x3f0] sm:$0xff] }
  0x4d   :  { %654 = vst [vmem:[#allocation5 + $0x3b8] sm:$0xff] %v398_v47  ;;  %v404_v59 = vmul.f32 -0.5, %v148_v56  ;;  %v150_v61 = vld [vmem:[#allocation2 + $0x3f8] sm:$0xff]  ;;  %v151_v62 = vld [vmem:[#allocation2 + $0x400] sm:$0xff]  ;;  %655 = vst [vmem:[#allocation5 + $0x3c0] sm:$0xff] %v399_v51  ;;  %v405_v63 = vmul.f32 -0.5, %v149_v60 }
  0x4e   :  { %656 = vst [vmem:[#allocation5 + $0x3c8] sm:$0xff] %v400_v52  ;;  %657 = vst [vmem:[#allocation5 + $0x3d0] sm:$0xff] %v401_v53  ;;  %v406_v0 = vmul.f32 -0.5, %v150_v61  ;;  %v407_v1 = vmul.f32 -0.5, %v151_v62  ;;  %v152_v2 = vld [vmem:[#allocation2 + $0x408] sm:$0xff]  ;;  %v153_v3 = vld [vmem:[#allocation2 + $0x410] sm:$0xff] }
  0x4f   :  { %v154_v4 = vld [vmem:[#allocation2 + $0x418] sm:$0xff]  ;;  %658 = vst [vmem:[#allocation5 + $0x3d8] sm:$0xff] %v402_v57  ;;  %659 = vst [vmem:[#allocation5 + $0x3e0] sm:$0xff] %v403_v58  ;;  %v408_v5 = vmul.f32 -0.5, %v152_v2  ;;  %v409_v6 = vmul.f32 -0.5, %v153_v3  ;;  %v155_v8 = vld [vmem:[#allocation2 + $0x420] sm:$0xff] }
  0x50   :  { %660 = vst [vmem:[#allocation5 + $0x3e8] sm:$0xff] %v404_v59  ;;  %v410_v7 = vmul.f32 -0.5, %v154_v4  ;;  %v156_v9 = vld [vmem:[#allocation2 + $0x428] sm:$0xff]  ;;  %v157_v10 = vld [vmem:[#allocation2 + $0x430] sm:$0xff]  ;;  %661 = vst [vmem:[#allocation5 + $0x3f0] sm:$0xff] %v405_v63  ;;  %v411_v11 = vmul.f32 -0.5, %v155_v8 }
  0x51   :  { %662 = vst [vmem:[#allocation5 + $0x3f8] sm:$0xff] %v406_v0  ;;  %663 = vst [vmem:[#allocation5 + $0x400] sm:$0xff] %v407_v1  ;;  %v412_v12 = vmul.f32 -0.5, %v156_v9  ;;  %v413_v13 = vmul.f32 -0.5, %v157_v10  ;;  %v158_v14 = vld [vmem:[#allocation2 + $0x438] sm:$0xff]  ;;  %v159_v15 = vld [vmem:[#allocation2 + $0x440] sm:$0xff] }
  0x52   :  { %v160_v16 = vld [vmem:[#allocation2 + $0x448] sm:$0xff]  ;;  %664 = vst [vmem:[#allocation5 + $0x408] sm:$0xff] %v408_v5  ;;  %665 = vst [vmem:[#allocation5 + $0x410] sm:$0xff] %v409_v6  ;;  %v414_v17 = vmul.f32 -0.5, %v158_v14  ;;  %v415_v18 = vmul.f32 -0.5, %v159_v15  ;;  %v161_v20 = vld [vmem:[#allocation2 + $0x450] sm:$0xff] }
  0x53   :  { %666 = vst [vmem:[#allocation5 + $0x418] sm:$0xff] %v410_v7  ;;  %v416_v19 = vmul.f32 -0.5, %v160_v16  ;;  %v162_v21 = vld [vmem:[#allocation2 + $0x458] sm:$0xff]  ;;  %v163_v22 = vld [vmem:[#allocation2 + $0x460] sm:$0xff]  ;;  %667 = vst [vmem:[#allocation5 + $0x420] sm:$0xff] %v411_v11  ;;  %v417_v23 = vmul.f32 -0.5, %v161_v20 }
  0x54   :  { %668 = vst [vmem:[#allocation5 + $0x428] sm:$0xff] %v412_v12  ;;  %669 = vst [vmem:[#allocation5 + $0x430] sm:$0xff] %v413_v13  ;;  %v418_v24 = vmul.f32 -0.5, %v162_v21  ;;  %v419_v25 = vmul.f32 -0.5, %v163_v22  ;;  %v164_v26 = vld [vmem:[#allocation2 + $0x468] sm:$0xff]  ;;  %v165_v27 = vld [vmem:[#allocation2 + $0x470] sm:$0xff] }
  0x55   :  { %v166_v28 = vld [vmem:[#allocation2 + $0x478] sm:$0xff]  ;;  %670 = vst [vmem:[#allocation5 + $0x438] sm:$0xff] %v414_v17  ;;  %671 = vst [vmem:[#allocation5 + $0x440] sm:$0xff] %v415_v18  ;;  %v420_v29 = vmul.f32 -0.5, %v164_v26  ;;  %v421_v30 = vmul.f32 -0.5, %v165_v27  ;;  %v167_v32 = vld [vmem:[#allocation2 + $0x480] sm:$0xff] }
  0x56   :  { %672 = vst [vmem:[#allocation5 + $0x448] sm:$0xff] %v416_v19  ;;  %v422_v31 = vmul.f32 -0.5, %v166_v28  ;;  %v168_v33 = vld [vmem:[#allocation2 + $0x488] sm:$0xff]  ;;  %v169_v34 = vld [vmem:[#allocation2 + $0x490] sm:$0xff]  ;;  %673 = vst [vmem:[#allocation5 + $0x450] sm:$0xff] %v417_v23  ;;  %v423_v35 = vmul.f32 -0.5, %v167_v32 }
  0x57   :  { %674 = vst [vmem:[#allocation5 + $0x458] sm:$0xff] %v418_v24  ;;  %675 = vst [vmem:[#allocation5 + $0x460] sm:$0xff] %v419_v25  ;;  %v424_v36 = vmul.f32 -0.5, %v168_v33  ;;  %v425_v37 = vmul.f32 -0.5, %v169_v34  ;;  %v170_v38 = vld [vmem:[#allocation2 + $0x498] sm:$0xff]  ;;  %v171_v39 = vld [vmem:[#allocation2 + $0x4a0] sm:$0xff] }
  0x58   :  { %v172_v40 = vld [vmem:[#allocation2 + $0x4a8] sm:$0xff]  ;;  %676 = vst [vmem:[#allocation5 + $0x468] sm:$0xff] %v420_v29  ;;  %677 = vst [vmem:[#allocation5 + $0x470] sm:$0xff] %v421_v30  ;;  %v426_v41 = vmul.f32 -0.5, %v170_v38  ;;  %v427_v42 = vmul.f32 -0.5, %v171_v39  ;;  %v173_v44 = vld [vmem:[#allocation2 + $0x4b0] sm:$0xff] }
  0x59   :  { %678 = vst [vmem:[#allocation5 + $0x478] sm:$0xff] %v422_v31  ;;  %v428_v43 = vmul.f32 -0.5, %v172_v40  ;;  %v174_v45 = vld [vmem:[#allocation2 + $0x4b8] sm:$0xff]  ;;  %v175_v46 = vld [vmem:[#allocation2 + $0x4c0] sm:$0xff]  ;;  %679 = vst [vmem:[#allocation5 + $0x480] sm:$0xff] %v423_v35  ;;  %v429_v47 = vmul.f32 -0.5, %v173_v44 }
  0x5a   :  { %680 = vst [vmem:[#allocation5 + $0x488] sm:$0xff] %v424_v36  ;;  %681 = vst [vmem:[#allocation5 + $0x490] sm:$0xff] %v425_v37  ;;  %v430_v48 = vmul.f32 -0.5, %v174_v45  ;;  %v431_v49 = vmul.f32 -0.5, %v175_v46  ;;  %v176_v50 = vld [vmem:[#allocation2 + $0x4c8] sm:$0xff]  ;;  %v177_v51 = vld [vmem:[#allocation2 + $0x4d0] sm:$0xff] }
  0x5b   :  { %v178_v52 = vld [vmem:[#allocation2 + $0x4d8] sm:$0xff]  ;;  %682 = vst [vmem:[#allocation5 + $0x498] sm:$0xff] %v426_v41  ;;  %683 = vst [vmem:[#allocation5 + $0x4a0] sm:$0xff] %v427_v42  ;;  %v432_v53 = vmul.f32 -0.5, %v176_v50  ;;  %v433_v54 = vmul.f32 -0.5, %v177_v51  ;;  %v179_v56 = vld [vmem:[#allocation2 + $0x4e0] sm:$0xff] }
  0x5c   :  { %684 = vst [vmem:[#allocation5 + $0x4a8] sm:$0xff] %v428_v43  ;;  %v434_v55 = vmul.f32 -0.5, %v178_v52  ;;  %v180_v57 = vld [vmem:[#allocation2 + $0x4e8] sm:$0xff]  ;;  %v181_v58 = vld [vmem:[#allocation2 + $0x4f0] sm:$0xff]  ;;  %685 = vst [vmem:[#allocation5 + $0x4b0] sm:$0xff] %v429_v47  ;;  %v435_v59 = vmul.f32 -0.5, %v179_v56 }
  0x5d   :  { %686 = vst [vmem:[#allocation5 + $0x4b8] sm:$0xff] %v430_v48  ;;  %687 = vst [vmem:[#allocation5 + $0x4c0] sm:$0xff] %v431_v49  ;;  %v436_v60 = vmul.f32 -0.5, %v180_v57  ;;  %v437_v61 = vmul.f32 -0.5, %v181_v58  ;;  %v182_v62 = vld [vmem:[#allocation2 + $0x4f8] sm:$0xff]  ;;  %v183_v63 = vld [vmem:[#allocation2 + $0x500] sm:$0xff] }
  0x5e   :  { %v184_v0 = vld [vmem:[#allocation2 + $0x508] sm:$0xff]  ;;  %688 = vst [vmem:[#allocation5 + $0x4c8] sm:$0xff] %v432_v53  ;;  %689 = vst [vmem:[#allocation5 + $0x4d0] sm:$0xff] %v433_v54  ;;  %v438_v1 = vmul.f32 -0.5, %v182_v62  ;;  %v439_v2 = vmul.f32 -0.5, %v183_v63  ;;  %v185_v4 = vld [vmem:[#allocation2 + $0x510] sm:$0xff] }
  0x5f   :  { %690 = vst [vmem:[#allocation5 + $0x4d8] sm:$0xff] %v434_v55  ;;  %v440_v3 = vmul.f32 -0.5, %v184_v0  ;;  %v186_v5 = vld [vmem:[#allocation2 + $0x518] sm:$0xff]  ;;  %v187_v6 = vld [vmem:[#allocation2 + $0x520] sm:$0xff]  ;;  %691 = vst [vmem:[#allocation5 + $0x4e0] sm:$0xff] %v435_v59  ;;  %v441_v7 = vmul.f32 -0.5, %v185_v4 }
  0x60   :  { %692 = vst [vmem:[#allocation5 + $0x4e8] sm:$0xff] %v436_v60  ;;  %693 = vst [vmem:[#allocation5 + $0x4f0] sm:$0xff] %v437_v61  ;;  %v442_v8 = vmul.f32 -0.5, %v186_v5  ;;  %v443_v9 = vmul.f32 -0.5, %v187_v6  ;;  %v188_v10 = vld [vmem:[#allocation2 + $0x528] sm:$0xff]  ;;  %v189_v11 = vld [vmem:[#allocation2 + $0x530] sm:$0xff] }
  0x61   :  { %v190_v12 = vld [vmem:[#allocation2 + $0x538] sm:$0xff]  ;;  %694 = vst [vmem:[#allocation5 + $0x4f8] sm:$0xff] %v438_v1  ;;  %695 = vst [vmem:[#allocation5 + $0x500] sm:$0xff] %v439_v2  ;;  %v444_v13 = vmul.f32 -0.5, %v188_v10  ;;  %v445_v14 = vmul.f32 -0.5, %v189_v11  ;;  %v191_v16 = vld [vmem:[#allocation2 + $0x540] sm:$0xff] }
  0x62   :  { %696 = vst [vmem:[#allocation5 + $0x508] sm:$0xff] %v440_v3  ;;  %v446_v15 = vmul.f32 -0.5, %v190_v12  ;;  %v192_v17 = vld [vmem:[#allocation2 + $0x548] sm:$0xff]  ;;  %v193_v18 = vld [vmem:[#allocation2 + $0x550] sm:$0xff]  ;;  %697 = vst [vmem:[#allocation5 + $0x510] sm:$0xff] %v441_v7  ;;  %v447_v19 = vmul.f32 -0.5, %v191_v16 }
  0x63   :  { %698 = vst [vmem:[#allocation5 + $0x518] sm:$0xff] %v442_v8  ;;  %699 = vst [vmem:[#allocation5 + $0x520] sm:$0xff] %v443_v9  ;;  %v448_v20 = vmul.f32 -0.5, %v192_v17  ;;  %v449_v21 = vmul.f32 -0.5, %v193_v18  ;;  %v194_v22 = vld [vmem:[#allocation2 + $0x558] sm:$0xff]  ;;  %v195_v23 = vld [vmem:[#allocation2 + $0x560] sm:$0xff] }
  0x64   :  { %v196_v24 = vld [vmem:[#allocation2 + $0x568] sm:$0xff]  ;;  %700 = vst [vmem:[#allocation5 + $0x528] sm:$0xff] %v444_v13  ;;  %701 = vst [vmem:[#allocation5 + $0x530] sm:$0xff] %v445_v14  ;;  %v450_v25 = vmul.f32 -0.5, %v194_v22  ;;  %v451_v26 = vmul.f32 -0.5, %v195_v23  ;;  %v197_v28 = vld [vmem:[#allocation2 + $0x570] sm:$0xff] }
  0x65   :  { %702 = vst [vmem:[#allocation5 + $0x538] sm:$0xff] %v446_v15  ;;  %v452_v27 = vmul.f32 -0.5, %v196_v24  ;;  %v198_v29 = vld [vmem:[#allocation2 + $0x578] sm:$0xff]  ;;  %v199_v30 = vld [vmem:[#allocation2 + $0x580] sm:$0xff]  ;;  %703 = vst [vmem:[#allocation5 + $0x540] sm:$0xff] %v447_v19  ;;  %v453_v31 = vmul.f32 -0.5, %v197_v28 }
  0x66   :  { %704 = vst [vmem:[#allocation5 + $0x548] sm:$0xff] %v448_v20  ;;  %705 = vst [vmem:[#allocation5 + $0x550] sm:$0xff] %v449_v21  ;;  %v454_v32 = vmul.f32 -0.5, %v198_v29  ;;  %v455_v33 = vmul.f32 -0.5, %v199_v30  ;;  %v200_v34 = vld [vmem:[#allocation2 + $0x588] sm:$0xff]  ;;  %v201_v35 = vld [vmem:[#allocation2 + $0x590] sm:$0xff] }
  0x67   :  { %v202_v36 = vld [vmem:[#allocation2 + $0x598] sm:$0xff]  ;;  %706 = vst [vmem:[#allocation5 + $0x558] sm:$0xff] %v450_v25  ;;  %707 = vst [vmem:[#allocation5 + $0x560] sm:$0xff] %v451_v26  ;;  %v456_v37 = vmul.f32 -0.5, %v200_v34  ;;  %v457_v38 = vmul.f32 -0.5, %v201_v35  ;;  %v203_v40 = vld [vmem:[#allocation2 + $0x5a0] sm:$0xff] }
  0x68   :  { %708 = vst [vmem:[#allocation5 + $0x568] sm:$0xff] %v452_v27  ;;  %v458_v39 = vmul.f32 -0.5, %v202_v36  ;;  %v204_v41 = vld [vmem:[#allocation2 + $0x5a8] sm:$0xff]  ;;  %v205_v42 = vld [vmem:[#allocation2 + $0x5b0] sm:$0xff]  ;;  %709 = vst [vmem:[#allocation5 + $0x570] sm:$0xff] %v453_v31  ;;  %v459_v43 = vmul.f32 -0.5, %v203_v40 }
  0x69   :  { %710 = vst [vmem:[#allocation5 + $0x578] sm:$0xff] %v454_v32  ;;  %711 = vst [vmem:[#allocation5 + $0x580] sm:$0xff] %v455_v33  ;;  %v460_v44 = vmul.f32 -0.5, %v204_v41  ;;  %v461_v45 = vmul.f32 -0.5, %v205_v42  ;;  %v206_v46 = vld [vmem:[#allocation2 + $0x5b8] sm:$0xff]  ;;  %v207_v47 = vld [vmem:[#allocation2 + $0x5c0] sm:$0xff] }
  0x6a   :  { %v208_v48 = vld [vmem:[#allocation2 + $0x5c8] sm:$0xff]  ;;  %712 = vst [vmem:[#allocation5 + $0x588] sm:$0xff] %v456_v37  ;;  %713 = vst [vmem:[#allocation5 + $0x590] sm:$0xff] %v457_v38  ;;  %v462_v49 = vmul.f32 -0.5, %v206_v46  ;;  %v463_v50 = vmul.f32 -0.5, %v207_v47  ;;  %v209_v52 = vld [vmem:[#allocation2 + $0x5d0] sm:$0xff] }
  0x6b   :  { %714 = vst [vmem:[#allocation5 + $0x598] sm:$0xff] %v458_v39  ;;  %v464_v51 = vmul.f32 -0.5, %v208_v48  ;;  %v210_v53 = vld [vmem:[#allocation2 + $0x5d8] sm:$0xff]  ;;  %v211_v54 = vld [vmem:[#allocation2 + $0x5e0] sm:$0xff]  ;;  %715 = vst [vmem:[#allocation5 + $0x5a0] sm:$0xff] %v459_v43  ;;  %v465_v55 = vmul.f32 -0.5, %v209_v52 }
  0x6c   :  { %716 = vst [vmem:[#allocation5 + $0x5a8] sm:$0xff] %v460_v44  ;;  %717 = vst [vmem:[#allocation5 + $0x5b0] sm:$0xff] %v461_v45  ;;  %v466_v56 = vmul.f32 -0.5, %v210_v53  ;;  %v467_v57 = vmul.f32 -0.5, %v211_v54  ;;  %v212_v58 = vld [vmem:[#allocation2 + $0x5e8] sm:$0xff]  ;;  %v213_v59 = vld [vmem:[#allocation2 + $0x5f0] sm:$0xff] }
  0x6d   :  { %v214_v60 = vld [vmem:[#allocation2 + $0x5f8] sm:$0xff]  ;;  %718 = vst [vmem:[#allocation5 + $0x5b8] sm:$0xff] %v462_v49  ;;  %719 = vst [vmem:[#allocation5 + $0x5c0] sm:$0xff] %v463_v50  ;;  %v468_v61 = vmul.f32 -0.5, %v212_v58  ;;  %v469_v62 = vmul.f32 -0.5, %v213_v59  ;;  %v215_v0 = vld [vmem:[#allocation2 + $0x600] sm:$0xff] }
  0x6e   :  { %720 = vst [vmem:[#allocation5 + $0x5c8] sm:$0xff] %v464_v51  ;;  %v470_v63 = vmul.f32 -0.5, %v214_v60  ;;  %v216_v1 = vld [vmem:[#allocation2 + $0x608] sm:$0xff]  ;;  %v217_v2 = vld [vmem:[#allocation2 + $0x610] sm:$0xff]  ;;  %721 = vst [vmem:[#allocation5 + $0x5d0] sm:$0xff] %v465_v55  ;;  %v471_v3 = vmul.f32 -0.5, %v215_v0 }
  0x6f   :  { %722 = vst [vmem:[#allocation5 + $0x5d8] sm:$0xff] %v466_v56  ;;  %723 = vst [vmem:[#allocation5 + $0x5e0] sm:$0xff] %v467_v57  ;;  %v472_v4 = vmul.f32 -0.5, %v216_v1  ;;  %v473_v5 = vmul.f32 -0.5, %v217_v2  ;;  %v218_v6 = vld [vmem:[#allocation2 + $0x618] sm:$0xff]  ;;  %v219_v7 = vld [vmem:[#allocation2 + $0x620] sm:$0xff] }
  0x70   :  { %v220_v8 = vld [vmem:[#allocation2 + $0x628] sm:$0xff]  ;;  %724 = vst [vmem:[#allocation5 + $0x5e8] sm:$0xff] %v468_v61  ;;  %725 = vst [vmem:[#allocation5 + $0x5f0] sm:$0xff] %v469_v62  ;;  %v474_v9 = vmul.f32 -0.5, %v218_v6  ;;  %v475_v10 = vmul.f32 -0.5, %v219_v7  ;;  %v221_v12 = vld [vmem:[#allocation2 + $0x630] sm:$0xff] }
  0x71   :  { %726 = vst [vmem:[#allocation5 + $0x5f8] sm:$0xff] %v470_v63  ;;  %v476_v11 = vmul.f32 -0.5, %v220_v8  ;;  %v222_v13 = vld [vmem:[#allocation2 + $0x638] sm:$0xff]  ;;  %v223_v14 = vld [vmem:[#allocation2 + $0x640] sm:$0xff]  ;;  %727 = vst [vmem:[#allocation5 + $0x600] sm:$0xff] %v471_v3  ;;  %v477_v15 = vmul.f32 -0.5, %v221_v12 }
  0x72   :  { %728 = vst [vmem:[#allocation5 + $0x608] sm:$0xff] %v472_v4  ;;  %729 = vst [vmem:[#allocation5 + $0x610] sm:$0xff] %v473_v5  ;;  %v478_v16 = vmul.f32 -0.5, %v222_v13  ;;  %v479_v17 = vmul.f32 -0.5, %v223_v14  ;;  %v224_v18 = vld [vmem:[#allocation2 + $0x648] sm:$0xff]  ;;  %v225_v19 = vld [vmem:[#allocation2 + $0x650] sm:$0xff] }
  0x73   :  { %v226_v20 = vld [vmem:[#allocation2 + $0x658] sm:$0xff]  ;;  %730 = vst [vmem:[#allocation5 + $0x618] sm:$0xff] %v474_v9  ;;  %731 = vst [vmem:[#allocation5 + $0x620] sm:$0xff] %v475_v10  ;;  %v480_v21 = vmul.f32 -0.5, %v224_v18  ;;  %v481_v22 = vmul.f32 -0.5, %v225_v19  ;;  %v227_v24 = vld [vmem:[#allocation2 + $0x660] sm:$0xff] }
  0x74   :  { %732 = vst [vmem:[#allocation5 + $0x628] sm:$0xff] %v476_v11  ;;  %v482_v23 = vmul.f32 -0.5, %v226_v20  ;;  %v228_v25 = vld [vmem:[#allocation2 + $0x668] sm:$0xff]  ;;  %v229_v26 = vld [vmem:[#allocation2 + $0x670] sm:$0xff]  ;;  %733 = vst [vmem:[#allocation5 + $0x630] sm:$0xff] %v477_v15  ;;  %v483_v27 = vmul.f32 -0.5, %v227_v24 }
  0x75   :  { %734 = vst [vmem:[#allocation5 + $0x638] sm:$0xff] %v478_v16  ;;  %735 = vst [vmem:[#allocation5 + $0x640] sm:$0xff] %v479_v17  ;;  %v484_v28 = vmul.f32 -0.5, %v228_v25  ;;  %v485_v29 = vmul.f32 -0.5, %v229_v26  ;;  %v230_v30 = vld [vmem:[#allocation2 + $0x678] sm:$0xff]  ;;  %v231_v31 = vld [vmem:[#allocation2 + $0x680] sm:$0xff] }
  0x76   :  { %v232_v32 = vld [vmem:[#allocation2 + $0x688] sm:$0xff]  ;;  %736 = vst [vmem:[#allocation5 + $0x648] sm:$0xff] %v480_v21  ;;  %737 = vst [vmem:[#allocation5 + $0x650] sm:$0xff] %v481_v22  ;;  %v486_v33 = vmul.f32 -0.5, %v230_v30  ;;  %v487_v34 = vmul.f32 -0.5, %v231_v31  ;;  %v233_v36 = vld [vmem:[#allocation2 + $0x690] sm:$0xff] }
  0x77   :  { %738 = vst [vmem:[#allocation5 + $0x658] sm:$0xff] %v482_v23  ;;  %v488_v35 = vmul.f32 -0.5, %v232_v32  ;;  %v234_v37 = vld [vmem:[#allocation2 + $0x698] sm:$0xff]  ;;  %v235_v38 = vld [vmem:[#allocation2 + $0x6a0] sm:$0xff]  ;;  %739 = vst [vmem:[#allocation5 + $0x660] sm:$0xff] %v483_v27  ;;  %v489_v39 = vmul.f32 -0.5, %v233_v36 }
  0x78   :  { %740 = vst [vmem:[#allocation5 + $0x668] sm:$0xff] %v484_v28  ;;  %741 = vst [vmem:[#allocation5 + $0x670] sm:$0xff] %v485_v29  ;;  %v490_v40 = vmul.f32 -0.5, %v234_v37  ;;  %v491_v41 = vmul.f32 -0.5, %v235_v38  ;;  %v236_v42 = vld [vmem:[#allocation2 + $0x6a8] sm:$0xff]  ;;  %v237_v43 = vld [vmem:[#allocation2 + $0x6b0] sm:$0xff] }
  0x79   :  { %v238_v44 = vld [vmem:[#allocation2 + $0x6b8] sm:$0xff]  ;;  %742 = vst [vmem:[#allocation5 + $0x678] sm:$0xff] %v486_v33  ;;  %743 = vst [vmem:[#allocation5 + $0x680] sm:$0xff] %v487_v34  ;;  %v492_v45 = vmul.f32 -0.5, %v236_v42  ;;  %v493_v46 = vmul.f32 -0.5, %v237_v43  ;;  %v239_v48 = vld [vmem:[#allocation2 + $0x6c0] sm:$0xff] }
  0x7a   :  { %744 = vst [vmem:[#allocation5 + $0x688] sm:$0xff] %v488_v35  ;;  %v494_v47 = vmul.f32 -0.5, %v238_v44  ;;  %v240_v49 = vld [vmem:[#allocation2 + $0x6c8] sm:$0xff]  ;;  %v241_v50 = vld [vmem:[#allocation2 + $0x6d0] sm:$0xff]  ;;  %745 = vst [vmem:[#allocation5 + $0x690] sm:$0xff] %v489_v39  ;;  %v495_v51 = vmul.f32 -0.5, %v239_v48 }
  0x7b   :  { %746 = vst [vmem:[#allocation5 + $0x698] sm:$0xff] %v490_v40  ;;  %747 = vst [vmem:[#allocation5 + $0x6a0] sm:$0xff] %v491_v41  ;;  %v496_v52 = vmul.f32 -0.5, %v240_v49  ;;  %v497_v53 = vmul.f32 -0.5, %v241_v50  ;;  %v242_v54 = vld [vmem:[#allocation2 + $0x6d8] sm:$0xff]  ;;  %v243_v55 = vld [vmem:[#allocation2 + $0x6e0] sm:$0xff] }
  0x7c   :  { %v244_v56 = vld [vmem:[#allocation2 + $0x6e8] sm:$0xff]  ;;  %748 = vst [vmem:[#allocation5 + $0x6a8] sm:$0xff] %v492_v45  ;;  %749 = vst [vmem:[#allocation5 + $0x6b0] sm:$0xff] %v493_v46  ;;  %v498_v57 = vmul.f32 -0.5, %v242_v54  ;;  %v499_v58 = vmul.f32 -0.5, %v243_v55  ;;  %v245_v60 = vld [vmem:[#allocation2 + $0x6f0] sm:$0xff] }
  0x7d   :  { %750 = vst [vmem:[#allocation5 + $0x6b8] sm:$0xff] %v494_v47  ;;  %v500_v59 = vmul.f32 -0.5, %v244_v56  ;;  %v246_v61 = vld [vmem:[#allocation2 + $0x6f8] sm:$0xff]  ;;  %v247_v62 = vld [vmem:[#allocation2 + $0x700] sm:$0xff]  ;;  %751 = vst [vmem:[#allocation5 + $0x6c0] sm:$0xff] %v495_v51  ;;  %v501_v63 = vmul.f32 -0.5, %v245_v60 }
  0x7e   :  { %752 = vst [vmem:[#allocation5 + $0x6c8] sm:$0xff] %v496_v52  ;;  %753 = vst [vmem:[#allocation5 + $0x6d0] sm:$0xff] %v497_v53  ;;  %v502_v0 = vmul.f32 -0.5, %v246_v61  ;;  %v503_v1 = vmul.f32 -0.5, %v247_v62  ;;  %v248_v2 = vld [vmem:[#allocation2 + $0x708] sm:$0xff]  ;;  %v249_v3 = vld [vmem:[#allocation2 + $0x710] sm:$0xff] }
  0x7f   :  { %v250_v4 = vld [vmem:[#allocation2 + $0x718] sm:$0xff]  ;;  %754 = vst [vmem:[#allocation5 + $0x6d8] sm:$0xff] %v498_v57  ;;  %755 = vst [vmem:[#allocation5 + $0x6e0] sm:$0xff] %v499_v58  ;;  %v504_v5 = vmul.f32 -0.5, %v248_v2  ;;  %v505_v6 = vmul.f32 -0.5, %v249_v3  ;;  %v251_v8 = vld [vmem:[#allocation2 + $0x720] sm:$0xff] }
  0x80   :  { %756 = vst [vmem:[#allocation5 + $0x6e8] sm:$0xff] %v500_v59  ;;  %v506_v7 = vmul.f32 -0.5, %v250_v4  ;;  %v252_v9 = vld [vmem:[#allocation2 + $0x728] sm:$0xff]  ;;  %v253_v10 = vld [vmem:[#allocation2 + $0x730] sm:$0xff]  ;;  %757 = vst [vmem:[#allocation5 + $0x6f0] sm:$0xff] %v501_v63  ;;  %v507_v11 = vmul.f32 -0.5, %v251_v8 }
  0x81   :  { %758 = vst [vmem:[#allocation5 + $0x6f8] sm:$0xff] %v502_v0  ;;  %759 = vst [vmem:[#allocation5 + $0x700] sm:$0xff] %v503_v1  ;;  %v508_v12 = vmul.f32 -0.5, %v252_v9  ;;  %v509_v13 = vmul.f32 -0.5, %v253_v10  ;;  %v254_v14 = vld [vmem:[#allocation2 + $0x738] sm:$0xff]  ;;  %v255_v15 = vld [vmem:[#allocation2 + $0x740] sm:$0xff] }
  0x82   :  { %v256_v16 = vld [vmem:[#allocation2 + $0x748] sm:$0xff]  ;;  %760 = vst [vmem:[#allocation5 + $0x708] sm:$0xff] %v504_v5  ;;  %761 = vst [vmem:[#allocation5 + $0x710] sm:$0xff] %v505_v6  ;;  %v510_v17 = vmul.f32 -0.5, %v254_v14  ;;  %v511_v18 = vmul.f32 -0.5, %v255_v15  ;;  %v257_v20 = vld [vmem:[#allocation2 + $0x750] sm:$0xff] }
  0x83   :  { %762 = vst [vmem:[#allocation5 + $0x718] sm:$0xff] %v506_v7  ;;  %v512_v19 = vmul.f32 -0.5, %v256_v16  ;;  %v258_v21 = vld [vmem:[#allocation2 + $0x758] sm:$0xff]  ;;  %v259_v22 = vld [vmem:[#allocation2 + $0x760] sm:$0xff]  ;;  %763 = vst [vmem:[#allocation5 + $0x720] sm:$0xff] %v507_v11  ;;  %v513_v23 = vmul.f32 -0.5, %v257_v20 }
  0x84   :  { %764 = vst [vmem:[#allocation5 + $0x728] sm:$0xff] %v508_v12  ;;  %765 = vst [vmem:[#allocation5 + $0x730] sm:$0xff] %v509_v13  ;;  %v514_v24 = vmul.f32 -0.5, %v258_v21  ;;  %v515_v25 = vmul.f32 -0.5, %v259_v22  ;;  %v260_v26 = vld [vmem:[#allocation2 + $0x768] sm:$0xff]  ;;  %v261_v27 = vld [vmem:[#allocation2 + $0x770] sm:$0xff] }
  0x85   :  { %v262_v28 = vld [vmem:[#allocation2 + $0x778] sm:$0xff]  ;;  %766 = vst [vmem:[#allocation5 + $0x738] sm:$0xff] %v510_v17  ;;  %767 = vst [vmem:[#allocation5 + $0x740] sm:$0xff] %v511_v18  ;;  %v516_v29 = vmul.f32 -0.5, %v260_v26  ;;  %v517_v30 = vmul.f32 -0.5, %v261_v27  ;;  %v263_v32 = vld [vmem:[#allocation2 + $0x780] sm:$0xff] }
  0x86   :  { %768 = vst [vmem:[#allocation5 + $0x748] sm:$0xff] %v512_v19  ;;  %v518_v31 = vmul.f32 -0.5, %v262_v28  ;;  %v264_v33 = vld [vmem:[#allocation2 + $0x788] sm:$0xff]  ;;  %v265_v34 = vld [vmem:[#allocation2 + $0x790] sm:$0xff]  ;;  %769 = vst [vmem:[#allocation5 + $0x750] sm:$0xff] %v513_v23  ;;  %v519_v35 = vmul.f32 -0.5, %v263_v32 }
  0x87   :  { %770 = vst [vmem:[#allocation5 + $0x758] sm:$0xff] %v514_v24  ;;  %771 = vst [vmem:[#allocation5 + $0x760] sm:$0xff] %v515_v25  ;;  %v520_v36 = vmul.f32 -0.5, %v264_v33  ;;  %v521_v37 = vmul.f32 -0.5, %v265_v34  ;;  %v266_v38 = vld [vmem:[#allocation2 + $0x798] sm:$0xff]  ;;  %v267_v39 = vld [vmem:[#allocation2 + $0x7a0] sm:$0xff] }
  0x88   :  { %v268_v40 = vld [vmem:[#allocation2 + $0x7a8] sm:$0xff]  ;;  %772 = vst [vmem:[#allocation5 + $0x768] sm:$0xff] %v516_v29  ;;  %773 = vst [vmem:[#allocation5 + $0x770] sm:$0xff] %v517_v30  ;;  %v522_v41 = vmul.f32 -0.5, %v266_v38  ;;  %v523_v42 = vmul.f32 -0.5, %v267_v39  ;;  %v269_v44 = vld [vmem:[#allocation2 + $0x7b0] sm:$0xff] }
  0x89   :  { %774 = vst [vmem:[#allocation5 + $0x778] sm:$0xff] %v518_v31  ;;  %v524_v43 = vmul.f32 -0.5, %v268_v40  ;;  %v270_v45 = vld [vmem:[#allocation2 + $0x7b8] sm:$0xff]  ;;  %v271_v46 = vld [vmem:[#allocation2 + $0x7c0] sm:$0xff]  ;;  %775 = vst [vmem:[#allocation5 + $0x780] sm:$0xff] %v519_v35  ;;  %v525_v47 = vmul.f32 -0.5, %v269_v44 }
  0x8a   :  { %776 = vst [vmem:[#allocation5 + $0x788] sm:$0xff] %v520_v36  ;;  %777 = vst [vmem:[#allocation5 + $0x790] sm:$0xff] %v521_v37  ;;  %v526_v48 = vmul.f32 -0.5, %v270_v45  ;;  %v527_v49 = vmul.f32 -0.5, %v271_v46  ;;  %v272_v50 = vld [vmem:[#allocation2 + $0x7c8] sm:$0xff]  ;;  %v273_v51 = vld [vmem:[#allocation2 + $0x7d0] sm:$0xff] }
  0x8b   :  { %v274_v52 = vld [vmem:[#allocation2 + $0x7d8] sm:$0xff]  ;;  %778 = vst [vmem:[#allocation5 + $0x798] sm:$0xff] %v522_v41  ;;  %779 = vst [vmem:[#allocation5 + $0x7a0] sm:$0xff] %v523_v42  ;;  %v528_v53 = vmul.f32 -0.5, %v272_v50  ;;  %v529_v54 = vmul.f32 -0.5, %v273_v51  ;;  %v275_v56 = vld [vmem:[#allocation2 + $0x7e0] sm:$0xff] }
  0x8c   :  { %780 = vst [vmem:[#allocation5 + $0x7a8] sm:$0xff] %v524_v43  ;;  %v530_v55 = vmul.f32 -0.5, %v274_v52  ;;  %v276_v57 = vld [vmem:[#allocation2 + $0x7e8] sm:$0xff]  ;;  %v277_v58 = vld [vmem:[#allocation2 + $0x7f0] sm:$0xff]  ;;  %781 = vst [vmem:[#allocation5 + $0x7b0] sm:$0xff] %v525_v47  ;;  %v531_v59 = vmul.f32 -0.5, %v275_v56 }
  0x8d   :  { %782 = vst [vmem:[#allocation5 + $0x7b8] sm:$0xff] %v526_v48  ;;  %783 = vst [vmem:[#allocation5 + $0x7c0] sm:$0xff] %v527_v49  ;;  %v532_v60 = vmul.f32 -0.5, %v276_v57  ;;  %v533_v61 = vmul.f32 -0.5, %v277_v58  ;;  %v278_v62 = vld [vmem:[#allocation2 + $0x7f8] sm:$0xff] }
  0x8e   :  { %784 = vst [vmem:[#allocation5 + $0x7c8] sm:$0xff] %v528_v53  ;;  %785 = vst [vmem:[#allocation5 + $0x7d0] sm:$0xff] %v529_v54  ;;  %v534_v63 = vmul.f32 -0.5, %v278_v62 }
  0x8f   :  { %786 = vst [vmem:[#allocation5 + $0x7d8] sm:$0xff] %v530_v55  ;;  %787 = vst [vmem:[#allocation5 + $0x7e0] sm:$0xff] %v531_v59 }
  0x90   :  { %788 = vst [vmem:[#allocation5 + $0x7e8] sm:$0xff] %v532_v60  ;;  %789 = vst [vmem:[#allocation5 + $0x7f0] sm:$0xff] %v533_v61 }
  0x91   :  { %790 = vst [vmem:[#allocation5 + $0x7f8] sm:$0xff] %v534_v63 }
  0x92   :  { %843 = shalt.err (!%p840_p9)
}
  0x93   :  { %802 = dma.vmem_to_hbm [thread:$0]  %s797_s14, 32768, %s886_s1, [#allocation4], %s857_s9, %s857_s9, %s858_s10  }
  0x94   :  { %854 = dma.done.wait [#allocation4], 32768  }
  0x95   :  { %855 = vsyncadd [#allocation4], 4294934528 }
  0x96   :  { %806 = vsyncpa [#allocation3], 1 }
  0x97   :  { %807 = vsyncpa [#allocation4], 1 }

</bundles_post_ra>
